<compile_context>
chip_gen: v5e
topology: v5e:2x2
jax: 0.10.0
libtpu: 0.0.40
codegen_flags: <defaults>
</compile_context>

<pallas_src>
import functools
import math

import jax
import jax.numpy as jnp
from jax.experimental import pallas as pl
from jax.experimental.pallas import tpu as pltpu

_LANE = 128
_SUBLANE = 8
_PAD_LOGIT = -100.0   # sigmoid(-100) ~ 4e-44 and log1p(exp(-100)) ~ 4e-44 -> negligible


def _dice_ce_kernel(x_ref, t_ref, o_ref,
                    inter_acc, p_acc, tsum_acc, bce_acc,
                    *, batch, total_elems, lambda_dice, lambda_ce):
    k = pl.program_id(0)

    @pl.when(k == 0)
    def _():
        inter_acc[...] = jnp.zeros_like(inter_acc)
        p_acc[...] = jnp.zeros_like(p_acc)
        tsum_acc[...] = jnp.zeros_like(tsum_acc)
        bce_acc[...] = jnp.zeros_like(bce_acc)

    x = x_ref[...].astype(jnp.float32)          # (B, R, 128) logits tile
    t = t_ref[...].astype(jnp.float32)          # (B, R, 128) targets tile

    # Share the transcendentals: one exp + one log per element.
    e = jnp.exp(-jnp.abs(x))                    # exp(-|x|) in (0, 1]
    se = 1.0 / (1.0 + e)                        # sigmoid(|x|)
    probs = jnp.where(x >= 0.0, se, e * se)     # numerically-stable sigmoid(x)

    # Numerically-stable BCE-with-logits: max(x,0) - x*t + log(1 + exp(-|x|))
    bce = jnp.maximum(x, 0.0) - x * t + jnp.log1p(e)

    # Lane-wise partial sums per step (only the row axis is reduced here); the
    # cross-lane reduction happens once, in the finalize step below.
    inter_acc[...] += jnp.sum(probs * t, axis=1)
    p_acc[...] += jnp.sum(probs, axis=1)
    tsum_acc[...] += jnp.sum(t, axis=1)
    bce_acc[...] += jnp.sum(bce, axis=1)

    @pl.when(k == pl.num_programs(0) - 1)
    def _():
        smooth = 1.0
        inter = jnp.sum(inter_acc[...], axis=1, keepdims=True)   # (B, 1)
        psum = jnp.sum(p_acc[...], axis=1, keepdims=True)
        tsum = jnp.sum(tsum_acc[...], axis=1, keepdims=True)
        score = 2.0 * (inter + smooth) / (psum + tsum + smooth)
        dice_loss = 1.0 - jnp.sum(score) / float(batch)
        ce_loss = jnp.sum(bce_acc[...]) / float(total_elems)
        total = lambda_dice * dice_loss + lambda_ce * ce_loss
        o_ref[...] = jnp.broadcast_to(total, (1, 1)).astype(o_ref.dtype)


def dice_ce_loss(logits, targets, *, lambda_dice=1.0, lambda_ce=1.0,
                 target_block_bytes=2 * 1024 * 1024):
    if lambda_dice < 0.0:
        raise ValueError("lambda_dice should be no less than 0.0.")
    if lambda_ce < 0.0:
        raise ValueError("lambda_ce should be no less than 0.0.")
    if logits.shape != targets.shape:
        raise ValueError("input and target must have the same shape.")

    b = logits.shape[0]
    L = math.prod(logits.shape[1:])

    # Flatten per-sample (== .view(num, -1)); keep the native HBM dtype.
    x = logits.reshape(b, L)
    t = targets.reshape(b, L)

    # Lane-dense tiling: (B, L) -> (B, R, 128), with the per-step row count a
    # multiple of 8 so every (sublane, lane) tile of the vreg is occupied, and
    # sized so each input moves ~target_block_bytes per grid step (stays well
    # within the scoped-VMEM default on v5e/v6e/v7x with double buffering).
    r_total = pl.cdiv(L, _LANE)
    itemsize = max(jnp.dtype(logits.dtype).itemsize,
                   jnp.dtype(targets.dtype).itemsize)
    rows_budget = target_block_bytes // (b * _LANE * itemsize)
    rows_budget = max(_SUBLANE, (rows_budget // _SUBLANE) * _SUBLANE)
    r_ceil = pl.cdiv(r_total, _SUBLANE) * _SUBLANE
    block_r = min(rows_budget, r_ceil)
    r_pad = pl.cdiv(r_total, block_r) * block_r
    l_pad = r_pad * _LANE

    if l_pad != L:
        # Pad the tail: very-negative logits / zero targets contribute
        # (numerically) nothing to the dice statistics or the BCE sum.
        x = jnp.pad(x, ((0, 0), (0, l_pad - L)), constant_values=_PAD_LOGIT)
        t = jnp.pad(t, ((0, 0), (0, l_pad - L)))
    x = x.reshape(b, r_pad, _LANE)
    t = t.reshape(b, r_pad, _LANE)

    grid = (r_pad // block_r,)

    kernel = functools.partial(
        _dice_ce_kernel,
        batch=b,
        total_elems=b * L,          # BCE mean over the *unpadded* elements
        lambda_dice=float(lambda_dice),
        lambda_ce=float(lambda_ce),
    )

    # TODO(synk): on v7x the single 'arbitrary' reduction axis runs on one
    # TensorCore; a 2-way per-core partial reduction would use both TCs.
    out = pl.pallas_call(
        kernel,
        out_shape=jax.ShapeDtypeStruct((1, 1), jnp.float32),
        grid_spec=pltpu.PrefetchScalarGridSpec(
            num_scalar_prefetch=0,
            grid=grid,
            in_specs=[
                pl.BlockSpec((b, block_r, _LANE), lambda k: (0, k, 0)),
                pl.BlockSpec((b, block_r, _LANE), lambda k: (0, k, 0)),
            ],
            out_specs=pl.BlockSpec((1, 1), lambda k: (0, 0)),
            scratch_shapes=[
                pltpu.VMEM((b, _LANE), jnp.float32),   # sum(sigmoid * target)
                pltpu.VMEM((b, _LANE), jnp.float32),   # sum(sigmoid)
                pltpu.VMEM((b, _LANE), jnp.float32),   # sum(target)
                pltpu.VMEM((b, _LANE), jnp.float32),   # BCE partial sums
            ],
        ),
        compiler_params=pltpu.CompilerParams(
            dimension_semantics=("arbitrary",),
        ),
    )(x, t)
    return out[0, 0]


def _reference_dice_ce(logits, targets, lambda_dice=1.0, lambda_ce=1.0):
    # Plain-JAX reference mirroring the PyTorch module, for a sanity check.
    b = logits.shape[0]
    x = logits.reshape(b, -1).astype(jnp.float32)
    t = targets.reshape(b, -1).astype(jnp.float32)
    smooth = 1.0
    probs = jax.nn.sigmoid(x)
    inter = jnp.sum(probs * t, axis=1)
    score = 2.0 * (inter + smooth) / (jnp.sum(probs, axis=1) + jnp.sum(t, axis=1) + smooth)
    dice = 1.0 - jnp.sum(score) / b
    bce = jnp.maximum(x, 0.0) - x * t + jnp.log1p(jnp.exp(-jnp.abs(x)))
    ce = jnp.mean(bce)
    return lambda_dice * dice + lambda_ce * ce


if __name__ == "__main__":
    key = jax.random.PRNGKey(0)
    k_logits, k_target = jax.random.split(key)

    # BNHW, as in the module docstring.
    B, C, H, W = 2, 4, 16, 16
    logits = jax.random.normal(k_logits, (B, C, H, W), dtype=jnp.float32)
    targets = (jax.random.uniform(k_target, (B, C, H, W)) > 0.5).astype(jnp.float32)

    loss = dice_ce_loss(logits, targets, lambda_dice=1.0, lambda_ce=1.0)
    loss = jax.block_until_ready(loss)
    ref = _reference_dice_ce(logits, targets)
    assert jnp.allclose(loss, ref, rtol=1e-5, atol=1e-5), (loss, ref)

    # Exercise the padding path (feature size not a multiple of 128).
    k2a, k2b = jax.random.split(jax.random.PRNGKey(1))
    logits2 = jax.random.normal(k2a, (2, 3, 10, 10), dtype=jnp.float32)
    targets2 = (jax.random.uniform(k2b, (2, 3, 10, 10)) > 0.5).astype(jnp.float32)
    loss2 = jax.block_until_ready(dice_ce_loss(logits2, targets2))
    ref2 = _reference_dice_ce(logits2, targets2)
    assert jnp.allclose(loss2, ref2, rtol=1e-5, atol=1e-5), (loss2, ref2)

    print("KERNEL_OK")
</pallas_src>

<mosaic_0001>
module attributes {stable_mosaic.version = 11 : i64} {
  func.func @_dice_ce_kernel(%arg0: i32, %arg1: memref<2x8x128xf32, #tpu.memory_space<vmem>>, %arg2: memref<2x8x128xf32, #tpu.memory_space<vmem>>, %arg3: memref<1x1xf32, #tpu.memory_space<vmem>>, %arg4: memref<2x128xf32, #tpu.memory_space<vmem>>, %arg5: memref<2x128xf32, #tpu.memory_space<vmem>>, %arg6: memref<2x128xf32, #tpu.memory_space<vmem>>, %arg7: memref<2x128xf32, #tpu.memory_space<vmem>>) attributes {dimension_semantics = [#tpu.dimension_semantics<arbitrary>], iteration_bounds = array<i64: 1>, scalar_prefetch = 0 : i64, scratch_operands = 4 : i64, tpu.core_type = #tpu.core_type<tc>, window_params = [{transform_indices = @transform_0, window_bounds = array<i64: 2, 8, 128>}, {transform_indices = @transform_1, window_bounds = array<i64: 2, 8, 128>}, {pipeline_mode = #tpu.pipeline_mode<synchronous>, transform_indices = @transform_2, window_bounds = array<i64: 1, 1>}]} {
    %c0_i32 = arith.constant 0 : i32
    %0 = arith.cmpi eq, %arg0, %c0_i32 : i32
    %1 = arith.extui %0 : i1 to i32
    %c0_i32_0 = arith.constant 0 : i32
    %2 = arith.cmpi ne, %1, %c0_i32_0 : i32
    scf.if %2 {
      %cst_32 = arith.constant 0.000000e+00 : f32
      %43 = vector.broadcast %cst_32 : f32 to vector<2x128xf32>
      %c0_33 = arith.constant 0 : index
      %c0_34 = arith.constant 0 : index
      %44 = vector.load %arg4[%c0_33, %c0_34] : memref<2x128xf32, #tpu.memory_space<vmem>>, vector<2x128xf32>
      tpu.vector_store %arg4[%c0_33, %c0_34], %43 {strides = array<i32>} : memref<2x128xf32, #tpu.memory_space<vmem>>, vector<2x128xf32>,
      %cst_35 = arith.constant 0.000000e+00 : f32
      %45 = vector.broadcast %cst_35 : f32 to vector<2x128xf32>
      %c0_36 = arith.constant 0 : index
      %c0_37 = arith.constant 0 : index
      %46 = vector.load %arg5[%c0_36, %c0_37] : memref<2x128xf32, #tpu.memory_space<vmem>>, vector<2x128xf32>
      tpu.vector_store %arg5[%c0_36, %c0_37], %45 {strides = array<i32>} : memref<2x128xf32, #tpu.memory_space<vmem>>, vector<2x128xf32>,
      %cst_38 = arith.constant 0.000000e+00 : f32
      %47 = vector.broadcast %cst_38 : f32 to vector<2x128xf32>
      %c0_39 = arith.constant 0 : index
      %c0_40 = arith.constant 0 : index
      %48 = vector.load %arg6[%c0_39, %c0_40] : memref<2x128xf32, #tpu.memory_space<vmem>>, vector<2x128xf32>
      tpu.vector_store %arg6[%c0_39, %c0_40], %47 {strides = array<i32>} : memref<2x128xf32, #tpu.memory_space<vmem>>, vector<2x128xf32>,
      %cst_41 = arith.constant 0.000000e+00 : f32
      %49 = vector.broadcast %cst_41 : f32 to vector<2x128xf32>
      %c0_42 = arith.constant 0 : index
      %c0_43 = arith.constant 0 : index
      %50 = vector.load %arg7[%c0_42, %c0_43] : memref<2x128xf32, #tpu.memory_space<vmem>>, vector<2x128xf32>
      tpu.vector_store %arg7[%c0_42, %c0_43], %49 {strides = array<i32>} : memref<2x128xf32, #tpu.memory_space<vmem>>, vector<2x128xf32>,
    } else {
    }
    %c0 = arith.constant 0 : index
    %c0_1 = arith.constant 0 : index
    %c0_2 = arith.constant 0 : index
    %3 = vector.load %arg1[%c0, %c0_1, %c0_2] : memref<2x8x128xf32, #tpu.memory_space<vmem>>, vector<2x8x128xf32>
    %c0_3 = arith.constant 0 : index
    %c0_4 = arith.constant 0 : index
    %c0_5 = arith.constant 0 : index
    %4 = vector.load %arg2[%c0_3, %c0_4, %c0_5] : memref<2x8x128xf32, #tpu.memory_space<vmem>>, vector<2x8x128xf32>
    %5 = math.absf %3 : vector<2x8x128xf32>
    %cst = arith.constant 0.000000e+00 : f32
    %6 = vector.broadcast %cst : f32 to vector<2x8x128xf32>
    %7 = arith.subf %6, %5 : vector<2x8x128xf32>
    %8 = math.exp %7 : vector<2x8x128xf32>
    %cst_6 = arith.constant 1.000000e+00 : f32
    %9 = vector.broadcast %cst_6 : f32 to vector<2x8x128xf32>
    %10 = arith.addf %9, %8 : vector<2x8x128xf32>
    %cst_7 = arith.constant 1.000000e+00 : f32
    %11 = vector.broadcast %cst_7 : f32 to vector<2x8x128xf32>
    %12 = arith.divf %11, %10 : vector<2x8x128xf32>
    %cst_8 = arith.constant 0.000000e+00 : f32
    %13 = vector.broadcast %cst_8 : f32 to vector<2x8x128xf32>
    %14 = arith.cmpf oge, %3, %13 : vector<2x8x128xf32>
    %15 = arith.mulf %8, %12 : vector<2x8x128xf32>
    %16 = arith.select %14, %12, %15 : vector<2x8x128xi1>, vector<2x8x128xf32>
    %cst_9 = arith.constant 0.000000e+00 : f32
    %17 = vector.broadcast %cst_9 : f32 to vector<2x8x128xf32>
    %18 = arith.maximumf %3, %17 : vector<2x8x128xf32>
    %19 = arith.mulf %3, %4 : vector<2x8x128xf32>
    %20 = arith.subf %18, %19 : vector<2x8x128xf32>
    %21 = math.log1p %8 : vector<2x8x128xf32>
    %22 = arith.addf %20, %21 : vector<2x8x128xf32>
    %c0_10 = arith.constant 0 : index
    %c0_11 = arith.constant 0 : index
    %23 = vector.load %arg4[%c0_10, %c0_11] : memref<2x128xf32, #tpu.memory_space<vmem>>, vector<2x128xf32>
    %24 = arith.mulf %16, %4 : vector<2x8x128xf32>
    %cst_12 = arith.constant dense<0.000000e+00> : vector<2x128xf32>
    %25 = vector.multi_reduction <add>, %24, %cst_12 [1] : vector<2x8x128xf32> to vector<2x128xf32>
    %26 = arith.addf %23, %25 : vector<2x128xf32>
    %c0_13 = arith.constant 0 : index
    %c0_14 = arith.constant 0 : index
    %27 = vector.load %arg4[%c0_13, %c0_14] : memref<2x128xf32, #tpu.memory_space<vmem>>, vector<2x128xf32>
    tpu.vector_store %arg4[%c0_13, %c0_14], %26 {strides = array<i32>} : memref<2x128xf32, #tpu.memory_space<vmem>>, vector<2x128xf32>,
    %c0_15 = arith.constant 0 : index
    %c0_16 = arith.constant 0 : index
    %28 = vector.load %arg5[%c0_15, %c0_16] : memref<2x128xf32, #tpu.memory_space<vmem>>, vector<2x128xf32>
    %cst_17 = arith.constant dense<0.000000e+00> : vector<2x128xf32>
    %29 = vector.multi_reduction <add>, %16, %cst_17 [1] : vector<2x8x128xf32> to vector<2x128xf32>
    %30 = arith.addf %28, %29 : vector<2x128xf32>
    %c0_18 = arith.constant 0 : index
    %c0_19 = arith.constant 0 : index
    %31 = vector.load %arg5[%c0_18, %c0_19] : memref<2x128xf32, #tpu.memory_space<vmem>>, vector<2x128xf32>
    tpu.vector_store %arg5[%c0_18, %c0_19], %30 {strides = array<i32>} : memref<2x128xf32, #tpu.memory_space<vmem>>, vector<2x128xf32>,
    %c0_20 = arith.constant 0 : index
    %c0_21 = arith.constant 0 : index
    %32 = vector.load %arg6[%c0_20, %c0_21] : memref<2x128xf32, #tpu.memory_space<vmem>>, vector<2x128xf32>
    %cst_22 = arith.constant dense<0.000000e+00> : vector<2x128xf32>
    %33 = vector.multi_reduction <add>, %4, %cst_22 [1] : vector<2x8x128xf32> to vector<2x128xf32>
    %34 = arith.addf %32, %33 : vector<2x128xf32>
    %c0_23 = arith.constant 0 : index
    %c0_24 = arith.constant 0 : index
    %35 = vector.load %arg6[%c0_23, %c0_24] : memref<2x128xf32, #tpu.memory_space<vmem>>, vector<2x128xf32>
    tpu.vector_store %arg6[%c0_23, %c0_24], %34 {strides = array<i32>} : memref<2x128xf32, #tpu.memory_space<vmem>>, vector<2x128xf32>,
    %c0_25 = arith.constant 0 : index
    %c0_26 = arith.constant 0 : index
    %36 = vector.load %arg7[%c0_25, %c0_26] : memref<2x128xf32, #tpu.memory_space<vmem>>, vector<2x128xf32>
    %cst_27 = arith.constant dense<0.000000e+00> : vector<2x128xf32>
    %37 = vector.multi_reduction <add>, %22, %cst_27 [1] : vector<2x8x128xf32> to vector<2x128xf32>
    %38 = arith.addf %36, %37 : vector<2x128xf32>
    %c0_28 = arith.constant 0 : index
    %c0_29 = arith.constant 0 : index
    %39 = vector.load %arg7[%c0_28, %c0_29] : memref<2x128xf32, #tpu.memory_space<vmem>>, vector<2x128xf32>
    tpu.vector_store %arg7[%c0_28, %c0_29], %38 {strides = array<i32>} : memref<2x128xf32, #tpu.memory_space<vmem>>, vector<2x128xf32>,
    %c0_i32_30 = arith.constant 0 : i32
    %40 = arith.cmpi eq, %arg0, %c0_i32_30 : i32
    %41 = arith.extui %40 : i1 to i32
    %c0_i32_31 = arith.constant 0 : i32
    %42 = arith.cmpi ne, %41, %c0_i32_31 : i32
    scf.if %42 {
      %c0_32 = arith.constant 0 : index
      %c0_33 = arith.constant 0 : index
      %43 = vector.load %arg4[%c0_32, %c0_33] : memref<2x128xf32, #tpu.memory_space<vmem>>, vector<2x128xf32>
      %cst_34 = arith.constant dense<0.000000e+00> : vector<2xf32>
      %44 = vector.multi_reduction <add>, %43, %cst_34 [1] : vector<2x128xf32> to vector<2xf32>
      %45 = vector.shape_cast %44 : vector<2xf32> to vector<2x1xf32>
      %c0_35 = arith.constant 0 : index
      %c0_36 = arith.constant 0 : index
      %46 = vector.load %arg5[%c0_35, %c0_36] : memref<2x128xf32, #tpu.memory_space<vmem>>, vector<2x128xf32>
      %cst_37 = arith.constant dense<0.000000e+00> : vector<2xf32>
      %47 = vector.multi_reduction <add>, %46, %cst_37 [1] : vector<2x128xf32> to vector<2xf32>
      %48 = vector.shape_cast %47 : vector<2xf32> to vector<2x1xf32>
      %c0_38 = arith.constant 0 : index
      %c0_39 = arith.constant 0 : index
      %49 = vector.load %arg6[%c0_38, %c0_39] : memref<2x128xf32, #tpu.memory_space<vmem>>, vector<2x128xf32>
      %cst_40 = arith.constant dense<0.000000e+00> : vector<2xf32>
      %50 = vector.multi_reduction <add>, %49, %cst_40 [1] : vector<2x128xf32> to vector<2xf32>
      %51 = vector.shape_cast %50 : vector<2xf32> to vector<2x1xf32>
      %cst_41 = arith.constant 1.000000e+00 : f32
      %52 = vector.broadcast %cst_41 : f32 to vector<2x1xf32>
      %53 = arith.addf %45, %52 : vector<2x1xf32>
      %cst_42 = arith.constant 2.000000e+00 : f32
      %54 = vector.broadcast %cst_42 : f32 to vector<2x1xf32>
      %55 = arith.mulf %54, %53 : vector<2x1xf32>
      %56 = arith.addf %48, %51 : vector<2x1xf32>
      %cst_43 = arith.constant 1.000000e+00 : f32
      %57 = vector.broadcast %cst_43 : f32 to vector<2x1xf32>
      %58 = arith.addf %56, %57 : vector<2x1xf32>
      %59 = arith.divf %55, %58 : vector<2x1xf32>
      %60 = vector.shape_cast %59 : vector<2x1xf32> to vector<1x2x1xf32>
      %cst_44 = arith.constant dense<0.000000e+00> : vector<1xf32>
      %61 = vector.multi_reduction <add>, %60, %cst_44 [1, 2] : vector<1x2x1xf32> to vector<1xf32>
      %62 = vector.shape_cast %61 : vector<1xf32> to vector<1x1x1xf32>
      %63 = vector.extract %62[0, 0, 0] : f32 from vector<1x1x1xf32>
      %cst_45 = arith.constant 2.000000e+00 : f32
      %64 = arith.divf %63, %cst_45 : f32
      %cst_46 = arith.constant 1.000000e+00 : f32
      %65 = arith.subf %cst_46, %64 : f32
      %c0_47 = arith.constant 0 : index
      %c0_48 = arith.constant 0 : index
      %66 = vector.load %arg7[%c0_47, %c0_48] : memref<2x128xf32, #tpu.memory_space<vmem>>, vector<2x128xf32>
      %67 = vector.shape_cast %66 : vector<2x128xf32> to vector<1x2x128xf32>
      %cst_49 = arith.constant dense<0.000000e+00> : vector<1xf32>
      %68 = vector.multi_reduction <add>, %67, %cst_49 [1, 2] : vector<1x2x128xf32> to vector<1xf32>
      %69 = vector.shape_cast %68 : vector<1xf32> to vector<1x1x1xf32>
      %70 = vector.extract %69[0, 0, 0] : f32 from vector<1x1x1xf32>
      %cst_50 = arith.constant 2.048000e+03 : f32
      %71 = arith.divf %70, %cst_50 : f32
      %cst_51 = arith.constant 1.000000e+00 : f32
      %72 = arith.mulf %cst_51, %65 : f32
      %cst_52 = arith.constant 1.000000e+00 : f32
      %73 = arith.mulf %cst_52, %71 : f32
      %74 = arith.addf %72, %73 : f32
      %75 = vector.broadcast %74 : f32 to vector<1x1xf32>
      %c0_53 = arith.constant 0 : index
      %c0_54 = arith.constant 0 : index
      %76 = vector.load %arg3[%c0_53, %c0_54] : memref<1x1xf32, #tpu.memory_space<vmem>>, vector<1x1xf32>
      tpu.vector_store %arg3[%c0_53, %c0_54], %75 {strides = array<i32>} : memref<1x1xf32, #tpu.memory_space<vmem>>, vector<1x1xf32>,
    } else {
    }
    return
  }
  func.func @transform_0(%arg0: i32) -> (i32, i32, i32) {
    %c0_i32 = arith.constant 0 : i32
    %c0_i32_0 = arith.constant 0 : i32
    %c0_i32_1 = arith.constant 0 : i32
    return %c0_i32, %arg0, %c0_i32_0 : i32, i32, i32
  }
  func.func @transform_1(%arg0: i32) -> (i32, i32, i32) {
    %c0_i32 = arith.constant 0 : i32
    %c0_i32_0 = arith.constant 0 : i32
    %c0_i32_1 = arith.constant 0 : i32
    return %c0_i32, %arg0, %c0_i32_0 : i32, i32, i32
  }
  func.func @transform_2(%arg0: i32) -> (i32, i32) {
    %c0_i32 = arith.constant 0 : i32
    %c0_i32_0 = arith.constant 0 : i32
    %c0_i32_1 = arith.constant 0 : i32
    return %c0_i32, %c0_i32_0 : i32, i32
  }
}

</mosaic_0001>

<bundles_post_ra>
// kernel: tpu_custom_call.1
= control target key start
LH: loop header
LB: loop body
LE: loop exit
PB: predicated region body
PF: predicated region fallthrough
CT: control target
= control target key end

     0   :  { %7 = vsyncpa [#allocation7], 0  ;;  %s513_s0 = inlined_call_operand.hbm [shape: f32[2,8,128], index: 0, kind: input, shape index: {}]   ;;  %s514_s1 = inlined_call_operand.hbm [shape: f32[2,8,128], index: 1, kind: input, shape index: {}]   ;;  %s515_s2 = inlined_call_operand.hbm [shape: f32[1,1], index: 2, kind: output, shape index: {}]  }
   0x1   :  { %8 = vsyncpa [#allocation10], 0 }
   0x2   :  { %9 = vsyncpa [#allocation8], 0  ;;  %s14_s11 = sshll.u32 %s513_s0, 4  ;;  %s417_s12 = smov [#allocation6]   ;;  %s15_s11 = int_to_ptr.hbm [resolvable:$true] %s14_s11 }
   0x3   :  { %s16_s13 = sshll.u32 %s417_s12, 4  ;;  %s27_s16 = sshll.u32 %s514_s1, 4  ;;  %s17_s13 = int_to_ptr.vmem [resolvable:$true] %s16_s13  ;;  %s28_s16 = int_to_ptr.hbm [resolvable:$true] %s27_s16 }
   0x4   :  { %s418_s17 = smov 128   ;;  %s419_s18 = smov 8  }
   0x5   :  { %22 = dma.hbm_to_vmem [thread:$0]  %s15_s11, 256, %s17_s13, [#allocation7], %s418_s17, %s418_s17, %s419_s18  }
   0x6   :  { %s420_s19 = smov [#allocation9]  }
   0x7   :  { %s29_s20 = sshll.u32 %s420_s19, 4  ;;  %s30_s20 = int_to_ptr.vmem [resolvable:$true] %s29_s20 }
   0x8   :  { %35 = dma.hbm_to_vmem [thread:$0]  %s28_s16, 256, %s30_s20, [#allocation10], %s418_s17, %s418_s17, %s419_s18  }
   0x9   :  { %411 = dma.done.wait [#allocation7], 256  }
   0xa   :  { %412 = vsyncadd [#allocation7], 4294967040 }
   0xb   :  { %413 = dma.done.wait [#allocation10], 256  }
   0xc   :  { %414 = vsyncadd [#allocation10], 4294967040  ;;  %v421_v0 = vmov 0.0   ;;  %v446_v1 = vld [vmem:[#allocation6] sm:$0xff]  ;;  %v448_v2 = vld [vmem:[#allocation6 + $0x8] sm:$0xff]  ;;  %vm145_vm1 = vcmask 1041409  }
   0xd   :  { %49 = vst [vmem:[#allocation3] sm:$0x3] %v421_v0  ;;  %v56_v3 = vand.u32 2147483647, %v446_v1  ;;  %v57_v4 = vand.u32 2147483647, %v448_v2 }
   0xe   :  { %48 = vst [vmem:[#allocation2] sm:$0x3] %v421_v0  ;;  %v452_v9 = vld [vmem:[#allocation9] sm:$0xff]  ;;  %v454_v10 = vld [vmem:[#allocation9 + $0x8] sm:$0xff]  ;;  %vm96_vm9 = vcmp.ge.f32.partialorder %v446_v1, 0.0  ;;  %vm97_vm10 = vcmp.ge.f32.partialorder %v448_v2, 0.0 }
   0xf   :  { %50 = vst [vmem:[#allocation4] sm:$0x3] %v421_v0  ;;  %v58_v5 = vsub.f32 0.0, %v56_v3  ;;  %v59_v6 = vsub.f32 0.0, %v57_v4  ;;  %v170_v12 = vrot.slane %v452_v9, 4  ;;  %v176_v13 = vrot.slane %v454_v10, 4 }
  0x10   :  { %51 = vst [vmem:[#allocation5] sm:$0x3] %v421_v0  ;;  %vm211_vm11 = vcmask 1041408   ;;  %s294_s23 = sshll.u32 %s515_s2, 4  ;;  %s424_s27 = smov [#allocation11]   ;;  %s295_s23 = int_to_ptr.hbm [resolvable:$true] %s294_s23 }
  0x11   :  { %v60_v7 = vmul.f32 1.442695, %v58_v5  ;;  %v62_v8 = vmul.f32 1.442695, %v59_v6  ;;  %v171_v17 = vadd.f32 %v170_v12, %v452_v9  ;;  %v177_v18 = vadd.f32 %v176_v13, %v454_v10  ;;  %s292_s28 = sshll.u32 %s424_s27, 4  ;;  %s293_s28 = int_to_ptr.vmem [resolvable:$true] %s292_s28 }
  0x13   :  { %321 = vpow2.f32 %v60_v7  ;;  %v172_v19 = vrot.slane %v171_v17, 2  ;;  %v178_v20 = vrot.slane %v177_v18, 2 }
  0x14   :  { %323 = vpow2.f32 %v62_v8 }
  0x15   :  { %v173_v21 = vadd.f32 %v172_v19, %v171_v17  ;;  %v179_v22 = vadd.f32 %v178_v20, %v177_v18  ;;  %v150_v20 = vld [vmem:[#allocation3] sm:$0x3] }
  0x16   :  { %v169_v35 = vld [vmem:[#allocation4] sm:$0x3] }
  0x17   :  { %v174_v24 = vrot.slane %v173_v21, 1  ;;  %v180_v25 = vrot.slane %v179_v22, 1 }
  0x19   :  { %v456_v11 = vpop.eup %321  ;;  %v175_v31 = vadd.f32 %v174_v24, %v173_v21  ;;  %v181_v32 = vadd.f32 %v180_v25, %v179_v22  ;;  %v128_v25 = vld [vmem:[#allocation2] sm:$0x3] }
  0x1a   :  { %v460_v14 = vpop.eup %323  ;;  %v463_v15 = vadd.f32 1.0, %v456_v11 }
  0x1b   :  { %v466_v16 = vadd.f32 1.0, %v460_v14  ;;  %v184_v38 = vsel %vm145_vm1, %v181_v32, %v175_v31 }
  0x1c   :  { %325 = vrcp.f32 %v463_v15  ;;  %vm71_vm0 = vweird.f32 %v463_v15  ;;  %v75_v28 = vand.u32 2147483647, %v463_v15  ;;  %v77_v29 = vand.u32 2147483648, %v463_v15 }
  0x1d   :  { %327 = vrcp.f32 %v466_v16  ;;  %vm86_vm3 = vweird.f32 %v466_v16  ;;  %v92_v34 = vand.u32 2147483648, %v466_v16  ;;  %v90_v37 = vand.u32 2147483647, %v466_v16 }
  0x1e   :  { %v186_v40 = vadd.f32 %v184_v38, %v169_v35  ;;  %v78_v41 = vor.u32 1.1754944e-38, %v77_v29  ;;  %vm76_vm6 = vcmp.eq.f32.partialorder %v75_v28, 8.507059e+37  ;;  %329 = vlog2.f32 %v463_v15 }
  0x1f   :  { %v93_v44 = vor.u32 1.1754944e-38, %v92_v34  ;;  %vm91_vm8 = vcmp.eq.f32.partialorder %v90_v37, 8.507059e+37  ;;  %331 = vlog2.f32 %v466_v16  ;;  %v120_v37 = vmul.f32 -0.5, %v460_v14 }
  0x20   :  { %187 = vst [vmem:[#allocation4] sm:$0x3] %v186_v40 }
  0x22   :  { %v326_v23 = vpop.eup %325 }
  0x23   :  { %v328_v26 = vpop.eup %327  ;;  %v67_v27 = vmul.f32 %v326_v23, %v463_v15  ;;  %vm72_vm2 = vweird.f32 %v326_v23 }
  0x24   :  { %v82_v30 = vmul.f32 %v328_v26, %v466_v16  ;;  %vm87_vm4 = vweird.f32 %v328_v26  ;;  %vm73_vm5 = vmor %vm71_vm0, %vm72_vm2  ;;  %v330_v40 = vpop.eup %329  ;;  %vm242_vm2 = vcmask 1024  }
  0x25   :  { %v68_v33 = vsub.f32 1.0, %v67_v27  ;;  %vm88_vm7 = vmor %vm86_vm3, %vm87_vm4  ;;  %v332_v15 = vpop.eup %331 }
  0x26   :  { %v83_v36 = vsub.f32 1.0, %v82_v30 }
  0x27   :  { %v69_v39 = vmul.f32 %v326_v23, %v68_v33  ;;  %v219_v34 = vld [vmem:[#allocation4] sm:$0x3] }
  0x28   :  { %v84_v42 = vmul.f32 %v328_v26, %v83_v36  ;;  %v220_v35 = vsel %vm211_vm11, %v219_v34, 0.0  ;;  %v111_v36 = vmul.f32 -0.5, %v456_v11 }
  0x29   :  { %v70_v43 = vadd.f32 %v326_v23, %v69_v39  ;;  %v121_v39 = vadd.f32 1.0, %v120_v37 }
  0x2a   :  { %v85_v45 = vadd.f32 %v328_v26, %v84_v42  ;;  %v112_v38 = vadd.f32 1.0, %v111_v36  ;;  %v103_v42 = vmax.f32 %v448_v2, 0.0 }
  0x2b   :  { %v74_v46 = vsel %vm73_vm5, %v326_v23, %v70_v43  ;;  %v104_v43 = vmul.f32 %v452_v9, %v446_v1  ;;  %vm285_vm5 = vcmask 0  }
  0x2c   :  { %v79_v47 = vsel %vm76_vm6, %v78_v41, %v74_v46  ;;  %v89_v48 = vsel %vm88_vm7, %v328_v26, %v85_v45  ;;  %v102_v41 = vmax.f32 %v446_v1, 0.0  ;;  %v110_v45 = vmul.f32 0.6931472, %v330_v40 }
  0x2d   :  { %v94_v49 = vsel %vm91_vm8, %v93_v44, %v89_v48  ;;  %v98_v50 = vmul.f32 %v456_v11, %v79_v47  ;;  %v105_v44 = vmul.f32 %v454_v10, %v448_v2  ;;  %v113_v16 = vmul.f32 %v456_v11, %v112_v38 }
  0x2e   :  { %v99_v51 = vmul.f32 %v460_v14, %v94_v49  ;;  %v114_v46 = vand.u32 2147483647, %v456_v11  ;;  %v106_v48 = vsub.f32 %v102_v41, %v104_v43 }
  0x2f   :  { %v100_v52 = vsel %vm96_vm9, %v79_v47, %v98_v50  ;;  %v122_v47 = vmul.f32 %v460_v14, %v121_v39  ;;  %v119_v50 = vmul.f32 0.6931472, %v332_v15 }
  0x30   :  { %v101_v53 = vsel %vm97_vm10, %v94_v49, %v99_v51  ;;  %v151_v54 = vrot.slane %v100_v52, 4  ;;  %v129_v55 = vmul.f32 %v100_v52, %v452_v9  ;;  %v107_v49 = vsub.f32 %v103_v42, %v105_v44 }
  0x31   :  { %v157_v56 = vrot.slane %v101_v53, 4  ;;  %v130_v57 = vmul.f32 %v101_v53, %v454_v10  ;;  %v123_v51 = vand.u32 2147483647, %v460_v14  ;;  %vm115_vm12 = vcmp.lt.f32.partialorder %v114_v46, 0.0004427343 }
  0x32   :  { %v152_v58 = vadd.f32 %v151_v54, %v100_v52  ;;  %v131_v59 = vrot.slane %v129_v55, 4  ;;  %v116_v52 = vsel %vm115_vm12, %v113_v16, %v110_v45 }
  0x33   :  { %v158_v60 = vadd.f32 %v157_v56, %v101_v53  ;;  %v137_v61 = vrot.slane %v130_v57, 4  ;;  %vm124_vm13 = vcmp.lt.f32.partialorder %v123_v51, 0.0004427343  ;;  %v126_v9 = vadd.f32 %v116_v52, %v106_v48 }
  0x34   :  { %v153_v62 = vrot.slane %v152_v58, 2  ;;  %v132_v63 = vadd.f32 %v131_v59, %v129_v55  ;;  %v125_v1 = vsel %vm124_vm13, %v122_v47, %v119_v50 }
  0x35   :  { %v159_v0 = vrot.slane %v158_v60, 2  ;;  %v138_v3 = vadd.f32 %v137_v61, %v130_v57  ;;  %v127_v53 = vadd.f32 %v125_v1, %v107_v49  ;;  %v189_v2 = vrot.slane %v126_v9, 4 }
  0x36   :  { %v154_v4 = vadd.f32 %v153_v62, %v152_v58  ;;  %v133_v5 = vrot.slane %v132_v63, 2  ;;  %v188_v62 = vld [vmem:[#allocation5] sm:$0x3] }
  0x37   :  { %v160_v6 = vadd.f32 %v159_v0, %v158_v60  ;;  %v139_v7 = vrot.slane %v138_v3, 2  ;;  %v195_v10 = vrot.slane %v127_v53, 4  ;;  %v190_v54 = vadd.f32 %v189_v2, %v126_v9 }
  0x38   :  { %v155_v8 = vrot.slane %v154_v4, 1  ;;  %v134_v12 = vadd.f32 %v133_v5, %v132_v63 }
  0x39   :  { %v161_v13 = vrot.slane %v160_v6, 1  ;;  %v140_v17 = vadd.f32 %v139_v7, %v138_v3  ;;  %v196_v55 = vadd.f32 %v195_v10, %v127_v53  ;;  %v191_v56 = vrot.slane %v190_v54, 2 }
  0x3a   :  { %v156_v18 = vadd.f32 %v155_v8, %v154_v4  ;;  %v135_v19 = vrot.slane %v134_v12, 1 }
  0x3b   :  { %v162_v21 = vadd.f32 %v161_v13, %v160_v6  ;;  %v141_v22 = vrot.slane %v140_v17, 1  ;;  %v197_v57 = vrot.slane %v196_v55, 2  ;;  %v192_v11 = vadd.f32 %v191_v56, %v190_v54 }
  0x3c   :  { %v136_v23 = vadd.f32 %v135_v19, %v134_v12 }
  0x3d   :  { %v165_v24 = vsel %vm145_vm1, %v162_v21, %v156_v18  ;;  %v142_v26 = vadd.f32 %v141_v22, %v140_v17  ;;  %v198_v58 = vadd.f32 %v197_v57, %v196_v55  ;;  %v193_v59 = vrot.slane %v192_v11, 1 }
  0x3e   :  { %v167_v27 = vadd.f32 %v165_v24, %v150_v20 }
  0x3f   :  { %v146_v28 = vsel %vm145_vm1, %v142_v26, %v136_v23  ;;  %v199_v60 = vrot.slane %v198_v58, 1  ;;  %v194_v61 = vadd.f32 %v193_v59, %v192_v11 }
  0x40   :  { %168 = vst [vmem:[#allocation3] sm:$0x3] %v167_v27  ;;  %v148_v29 = vadd.f32 %v146_v28, %v128_v25 }
  0x41   :  { %v200_v63 = vadd.f32 %v199_v60, %v198_v58 }
  0x42   :  { %149 = vst [vmem:[#allocation2] sm:$0x3] %v148_v29 }
  0x43   :  { %v203_v14 = vsel %vm145_vm1, %v200_v63, %v194_v61 }
  0x44   :  { %v205_v0 = vadd.f32 %v203_v14, %v188_v62 }
  0x46   :  { %206 = vst [vmem:[#allocation5] sm:$0x3] %v205_v0 }
  0x47   :  { %v215_v30 = vld [vmem:[#allocation3] sm:$0x3] }
  0x48   :  { %v216_v31 = vsel %vm211_vm11, %v215_v30, 0.0  ;;  %v422_v30 = vmov 2.0  }
  0x49   :  { %217 = vadd.xlane.f32.xlu0 %v216_v31  ;;  %v210_v32 = vld [vmem:[#allocation2] sm:$0x3]  ;;  %v423_v31 = vmov 2048.0  }
  0x4a   :  { %v212_v33 = vsel %vm211_vm11, %v210_v32, 0.0 }
  0x4b   :  { %213 = vadd.xlane.f32.xlu1 %v212_v33 }
  0x4d   :  { %v263_v3 = vld [vmem:[#allocation5] sm:$0x3] }
  0x4e   :  { %v264_v4 = vsel %vm211_vm11, %v263_v3, 0.0 }
  0x4f   :  { %265 = vadd.xlane.f32.xlu2 %v264_v4 }
  0x51   :  { %221 = vadd.xlane.f32.xlu0 %v220_v35 }
  0xbc   :  { %v218_v5 = vpop.xlane.xlu0 %217 }
  0xbe   :  { %v214_v13 = vpop.xlane.xlu1 %213 }
  0xbf   :  { %v223_v19 = vadd.f32 1.0, %v214_v13 }
  0xc1   :  { %v224_v23 = vmul.f32 2.0, %v223_v19 }
  0xc2   :  { %v266_v32 = vpop.xlane.xlu2 %265 }
  0xc3   :  { %v267_v34 = vrot.slane %v266_v32, 4 }
  0xc4   :  { %v222_v6 = vpop.xlane.xlu0 %221 }
  0xc5   :  { %v225_v7 = vadd.f32 %v222_v6, %v218_v5  ;;  %v268_v37 = vadd.f32 %v267_v34, %v266_v32 }
  0xc7   :  { %v226_v8 = vadd.f32 1.0, %v225_v7  ;;  %v269_v41 = vrot.slane %v268_v37, 2 }
  0xc9   :  { %333 = vrcp.f32 %v226_v8  ;;  %v238_v20 = vand.u32 2147483648, %v226_v8  ;;  %v236_v22 = vand.u32 2147483647, %v226_v8  ;;  %vm232_vm15 = vweird.f32 %v226_v8 }
  0xca   :  { %335 = vrcp.f32 %v422_v30  ;;  %v270_v45 = vadd.f32 %v269_v41, %v268_v37 }
  0xcb   :  { %v239_v25 = vor.u32 1.1754944e-38, %v238_v20  ;;  %vm237_vm1 = vcmp.eq.f32.partialorder %v236_v22, 8.507059e+37  ;;  %337 = vrcp.f32 %v423_v31 }
  0xcc   :  { %v271_v50 = vrot.slane %v270_v45, 1 }
  0xce   :  { %v272_v9 = vadd.f32 %v271_v50, %v270_v45 }
  0xcf   :  { %v334_v12 = vpop.eup %333 }
  0xd0   :  { %v228_v17 = vmul.f32 %v334_v12, %v226_v8  ;;  %vm233_vm14 = vweird.f32 %v334_v12  ;;  %v336_v33 = vpop.eup %335 }
  0xd1   :  { %vm234_vm0 = vmor %vm232_vm15, %vm233_vm14  ;;  %v338_v35 = vpop.eup %337  ;;  %v254_v36 = vmul.f32 2.0, %v336_v33  ;;  %vm258_vm3 = vweird.f32 %v336_v33 }
  0xd2   :  { %v229_v18 = vsub.f32 1.0, %v228_v17  ;;  %v275_v38 = vmul.f32 2048.0, %v338_v35  ;;  %vm279_vm4 = vweird.f32 %v338_v35 }
  0xd3   :  { %v255_v39 = vsub.f32 1.0, %v254_v36 }
  0xd4   :  { %v230_v21 = vmul.f32 %v334_v12, %v229_v18  ;;  %v276_v43 = vsub.f32 1.0, %v275_v38 }
  0xd5   :  { %v256_v15 = vmul.f32 %v336_v33, %v255_v39 }
  0xd6   :  { %v231_v24 = vadd.f32 %v334_v12, %v230_v21  ;;  %v277_v46 = vmul.f32 %v338_v35, %v276_v43 }
  0xd7   :  { %v257_v48 = vadd.f32 %v336_v33, %v256_v15 }
  0xd8   :  { %v235_v26 = vsel %vm234_vm0, %v334_v12, %v231_v24  ;;  %v278_v51 = vadd.f32 %v338_v35, %v277_v46 }
  0xd9   :  { %v240_v27 = vsel %vm237_vm1, %v239_v25, %v235_v26  ;;  %v259_v1 = vsel %vm258_vm3, %v336_v33, %v257_v48 }
  0xda   :  { %v241_v28 = vmul.f32 %v240_v27, %v224_v23  ;;  %v280_v53 = vsel %vm279_vm4, %v338_v35, %v278_v51 }
  0xdc   :  { %v243_v29 = vsel %vm242_vm2, %v241_v28, 0.0 }
  0xdd   :  { %244 = vadd.xlane.f32.xlu1 %v243_v29 }
 0x150   :  { %v245_v40 = vpop.xlane.xlu1 %244 }
 0x151   :  { %v246_v42 = vrot.slane %v245_v40, 4 }
 0x153   :  { %v247_v44 = vadd.f32 %v246_v42, %v245_v40 }
 0x155   :  { %v248_v16 = vrot.slane %v247_v44, 2 }
 0x157   :  { %v249_v47 = vadd.f32 %v248_v16, %v247_v44 }
 0x159   :  { %v250_v49 = vrot.slane %v249_v47, 1 }
 0x15b   :  { %v251_v52 = vadd.f32 %v250_v49, %v249_v47 }
 0x15d   :  { %305 = vpush %v251_v52 }
 0x15e   :  { %307 = vpush %v259_v1 }
 0x15f   :  { %309 = vpush %v272_v9 }
 0x160   :  { %311 = vpush %v280_v53 }
 0x18e   :  { %s306_s0 = spop %305 }
 0x18f   :  { %s308_s1 = spop %307 }
 0x190   :  { %s261_s24 = smul.f32 %s308_s1, %s306_s0  ;;  %s310_s25 = spop %309 }
 0x191   :  { %s312_s26 = spop %311 }
 0x192   :  { %s262_s29 = ssub.f32 1.0, %s261_s24  ;;  %s282_s30 = smul.f32 %s312_s26, %s310_s25 }
 0x194   :  { %s283_s3 = sadd.f32 %s282_s30, %s262_s29 }
 0x196   :  { %v284_v2 = vstv %s283_s3 }
 0x197   :  { %286 = vst.msk [vmem:[#allocation11] sm:$0x1] %vm285_vm5, %v284_v2 }
 0x198   :  { %297 = dma.vmem_to_hbm [thread:$0]  %s293_s28, 16, %s295_s23, [#allocation8]  }
 0x199   :  { %415 = dma.done.wait [#allocation8], 16  }
 0x19a   :  { %416 = vsyncadd [#allocation8], 4294967280 }
 0x19b   :  { %302 = vsyncpa [#allocation7], 1 }
 0x19c   :  { %303 = vsyncpa [#allocation10], 1 }
 0x19d   :  { %304 = vsyncpa [#allocation8], 1 }

</bundles_post_ra>
